<compile_context>
chip_gen: v6e
topology: v6e:2x2x1
jax: 0.10.0
libtpu: 0.0.40
codegen_flags: <defaults>
</compile_context>

<pallas_src>
import functools
import math

import jax
import jax.numpy as jnp
from jax.experimental import pallas as pl
from jax.experimental.pallas import tpu as pltpu

_NEG = -1e30  # large-negative (finite) mask value: avoids inf-inf = nan in online max


def _round_up(v, m):
    return (v + m - 1) // m * m


def _infonce_kernel(x_ref, y_ref, out_ref,
                    m_row, l_row, m_col, l_col, acc,
                    *, n_valid, single_exp):
    """Process one (row-tile i, col-tile j) block of the NxN logits matrix.

    Grid = (row_tiles over `other`/y, col_tiles over `input`/x), j innermost.
    Inputs are PRE-normalized and PRE-scaled (scale folded into x) by the prologue.
    Block logits L = y @ x.T (T, T), computed once on the MXU:
      * row-wise CE (loss_one)  : online LSE over j, scratch (T, 1)
      * col-wise CE (loss_other): online LSE over i, scratch (n_tiles, 1, T)
      * positives: diagonal blocks only, as sum(y*x, -1)
    loss = 0.5/N * (sum_row_lse + sum_col_lse - 2*sum_diag), written once at the end.

    Relies on strictly sequential row-major grid iteration (both axes "arbitrary");
    do NOT mark axis 0 "parallel" without per-core column/acc accumulators.
    """
    i = pl.program_id(0)            # row tile (over `other`)
    j = pl.program_id(1)            # col tile (over `input`), innermost
    t = x_ref.shape[0]
    n_tiles = m_col.shape[0]        # static
    n_padded = n_tiles * t
    pad = n_padded - n_valid        # static: trace-time specialization of masking

    # ---- zero the scalar accumulator on the very first grid step -------------
    @pl.when((i == 0) & (j == 0))
    def _():
        acc[...] = jnp.zeros_like(acc)

    # ---- single matmul for this block (rows = other, cols = input) -----------
    lb = jax.lax.dot_general(
        y_ref[...], x_ref[...],
        dimension_numbers=(((1,), (1,)), ((), ())),   # contract feature dim, no transpose
        preferred_element_type=jnp.float32)           # (T, T) f32

    # ---- ONE combined padding mask (only emitted when padding exists) --------
    if pad:
        row_valid = (i * t + jax.lax.broadcasted_iota(jnp.int32, (t, 1), 0)) < n_valid
        col_valid = (j * t + jax.lax.broadcasted_iota(jnp.int32, (1, t), 1)) < n_valid
        lb = jnp.where(row_valid & col_valid, lb, _NEG)
    else:
        row_valid = col_valid = None

    # ================= row-wise CE (loss_one): reduce over j ==================
    @pl.when(j == 0)
    def _():
        m_row[...] = jnp.full_like(m_row, _NEG)
        l_row[...] = jnp.zeros_like(l_row)

    m_old = m_row[...]
    m_new = jnp.maximum(m_old, jnp.max(lb, axis=1, keepdims=True))
    p = jnp.exp(lb - m_new)                            # the single full (T,T) exp
    l_row[...] = jnp.exp(m_old - m_new) * l_row[...] + jnp.sum(p, axis=1, keepdims=True)
    m_row[...] = m_new

    @pl.when(j == n_tiles - 1)
    def _():
        lse_r = m_row[...] + jnp.log(l_row[...])                 # (T, 1)
        if row_valid is not None:
            lse_r = jnp.where(row_valid, lse_r, 0.0)
        acc[...] += jnp.sum(lse_r, keepdims=True)

    # ============== column-wise CE (loss_other): reduce over i ================
    @pl.when(i == 0)
    def _():
        m_col[j] = jnp.full((1, t), _NEG, jnp.float32)
        l_col[j] = jnp.zeros((1, t), jnp.float32)

    mc_old = m_col[j]
    mc_new = jnp.maximum(mc_old, jnp.max(lb, axis=0, keepdims=True))
    if single_exp:
        # Reuse P: sum_i exp(lb - mc_new[j]) = exp(s - mc_new[j]) * sum_i P*exp(m_new[i]-s)
        # Exact math; safe because the static gate guarantees 2*scale <= 80, so the
        # clamp below never fires for valid columns (it only cleans padded columns).
        s = jnp.max(m_new, keepdims=True)                         # (1,1) block shift
        w = jnp.exp(m_new - s)                                    # (T,1), <= 1
        c = jnp.sum(p * w, axis=0, keepdims=True)                 # (1,T): sum_i exp(lb - s)
        contrib = jnp.exp(jnp.minimum(s - mc_new, 85.0)) * c
    else:
        contrib = jnp.sum(jnp.exp(lb - mc_new), axis=0, keepdims=True)
    l_col[j] = jnp.exp(mc_old - mc_new) * l_col[j] + contrib
    m_col[j] = mc_new

    @pl.when(i == n_tiles - 1)
    def _():
        lse_c = m_col[j] + jnp.log(l_col[j])                      # (1, T)
        if col_valid is not None:
            lse_c = jnp.where(col_valid, lse_c, 0.0)
        acc[...] += jnp.sum(lse_c, keepdims=True)

    # ====== positives: diagonal blocks only, as row-wise dot products =========
    @pl.when(i == j)
    def _():
        # Padded rows are all-zero after normalization -> contribute exactly 0.
        acc[...] += (-2.0) * jnp.sum(
            y_ref[...].astype(jnp.float32) * x_ref[...].astype(jnp.float32),
            keepdims=True)

    # ---- final scalar: 0.5 * (mean row CE + mean col CE) ---------------------
    @pl.when((i == n_tiles - 1) & (j == n_tiles - 1))
    def _():
        out_ref[...] = acc[...] * (0.5 / n_valid)


def infonce_loss(input, other, log_temperature, *,
                 min_temperature=None, max_temperature=None,
                 block_size=512, matmul_dtype=jnp.bfloat16,
                 single_exp=None,
                 vmem_limit_bytes=48 * 1024 * 1024):
    """Forward pass of _InfoNCELoss (dim=0, reduction='mean', single device)."""
    x = jnp.asarray(input)
    y = jnp.asarray(other)
    n, d = x.shape
    assert y.shape == (n, d)

    # temperature = exp(-clamp(log_temperature))  (clamp bounds are static floats)
    lt = jnp.asarray(log_temperature, jnp.float32)
    if min_temperature is not None:
        lt = jnp.maximum(lt, math.log(min_temperature))
    if max_temperature is not None:
        lt = jnp.minimum(lt, math.log(max_temperature))
    scale = jnp.exp(-lt)

    # Static upper bound on scale -> static gate for the single-exp column path.
    scale_bound = None
    if isinstance(log_temperature, (int, float)):
        lt_c = float(log_temperature)
        if min_temperature is not None:
            lt_c = max(lt_c, math.log(min_temperature))
        if max_temperature is not None:
            lt_c = min(lt_c, math.log(max_temperature))
        scale_bound = math.exp(-lt_c)
    elif min_temperature is not None:
        scale_bound = 1.0 / min_temperature
    if single_exp is None:
        single_exp = (scale_bound is not None) and (2.0 * scale_bound <= 80.0)

    # Tiling: samples -> multiple of the tile; features -> multiple of 256 lanes
    # (full K-pass for the 256x256 bf16 MXU; 128 suffices for tiny D / v5e).
    t = block_size if n >= block_size else _round_up(n, 8)
    t = _round_up(t, 8)
    n_pad = _round_up(n, t)
    d_pad = 128 if d <= 128 else _round_up(d, 256)
    n_tiles = n_pad // t

    # ---- prologue (one fused pass, hoisted OUT of the grid kernel) -----------
    # normalize (F.normalize eps=1e-12) + fold scale into `input` + cast + pad.
    # Zero pad rows stay zero after normalization and are masked in-kernel.
    def _prep(v, s):
        v32 = v.astype(jnp.float32)
        inv = jax.lax.rsqrt(jnp.maximum(jnp.sum(v32 * v32, axis=-1, keepdims=True), 1e-24))
        vn = v32 * inv
        if s is not None:
            vn = vn * s
        vn = vn.astype(matmul_dtype)
        return jnp.pad(vn, ((0, n_pad - n), (0, d_pad - d)))

    xs = _prep(x, scale)     # `input` (scaled) -> logit columns
    yn = _prep(y, None)      # `other`          -> logit rows

    kernel = functools.partial(_infonce_kernel, n_valid=n, single_exp=single_exp)

    out = pl.pallas_call(
        kernel,
        out_shape=jax.ShapeDtypeStruct((1, 1), jnp.float32),
        grid_spec=pltpu.PrefetchScalarGridSpec(
            num_scalar_prefetch=0,
            grid=(n_tiles, n_tiles),   # (row tiles over `other`, col tiles over `input`)
            in_specs=[
                pl.BlockSpec((t, d_pad), lambda i, j: (j, 0)),    # input  -> logits columns
                pl.BlockSpec((t, d_pad), lambda i, j: (i, 0)),    # other  -> logits rows
            ],
            out_specs=pl.BlockSpec((1, 1), lambda i, j: (0, 0)),
            scratch_shapes=[
                pltpu.VMEM((t, 1), jnp.float32),            # m_row (per row tile)
                pltpu.VMEM((t, 1), jnp.float32),            # l_row (per row tile)
                pltpu.VMEM((n_tiles, 1, t), jnp.float32),   # m_col (persistent, leading idx)
                pltpu.VMEM((n_tiles, 1, t), jnp.float32),   # l_col (persistent, leading idx)
                pltpu.VMEM((1, 1), jnp.float32),            # scalar accumulator
            ],
        ),
        compiler_params=pltpu.CompilerParams(
            # Both grid axes are reduction axes for one of the two CE directions and
            # the scalar accumulator is shared -> "arbitrary" (see megacore TODO).
            dimension_semantics=("arbitrary", "arbitrary"),
            vmem_limit_bytes=vmem_limit_bytes,
        ),
    )(xs, yn)
    return out[0, 0]


def infonce_ref(x, y, log_temperature, min_temperature=None, max_temperature=None):
    """Pure-JAX reference mirroring the PyTorch forward (single device, dim=0)."""
    x = jnp.asarray(x, jnp.float32)
    y = jnp.asarray(y, jnp.float32)
    lt = jnp.asarray(log_temperature, jnp.float32)
    if min_temperature is not None:
        lt = jnp.maximum(lt, math.log(min_temperature))
    if max_temperature is not None:
        lt = jnp.minimum(lt, math.log(max_temperature))
    scale = jnp.exp(-lt)
    xn = x / jnp.maximum(jnp.linalg.norm(x, axis=-1, keepdims=True), 1e-12)
    yn = y / jnp.maximum(jnp.linalg.norm(y, axis=-1, keepdims=True), 1e-12)
    n = x.shape[0]
    tgt = jnp.arange(n)

    def ce(logits):
        return jnp.mean(jax.nn.logsumexp(logits, axis=-1) - logits[tgt, tgt])

    return 0.5 * (ce(yn @ xn.T * scale) + ce(xn @ yn.T * scale))


if __name__ == "__main__":
    temperature = 0.5
    log_temperature = math.log(temperature)

    key = jax.random.PRNGKey(0)
    kx1, ky1, kx2, ky2 = jax.random.split(key, 4)

    # Case 1: module-sized demo (N=8 samples, D=32 features), exact f32 matmul,
    # single-exp path (auto-enabled: scale=2 is statically bounded).
    x1 = jax.random.normal(kx1, (8, 32), dtype=jnp.float32)
    y1 = jax.random.normal(ky1, (8, 32), dtype=jnp.float32)
    loss1 = jax.block_until_ready(
        infonce_loss(x1, y1, log_temperature, matmul_dtype=jnp.float32))
    ref1 = infonce_ref(x1, y1, log_temperature)
    assert jnp.isfinite(loss1), "loss1 is not finite"
    assert jnp.allclose(loss1, ref1, rtol=1e-4, atol=1e-4), (loss1, ref1)

    # Case 2: forces a 3x3 tiled grid + padding masks (block_size=128, N=300), exact
    # f32 matmul, single-exp path -> any mismatch would be a tiling/accum logic bug.
    x2 = jax.random.normal(kx2, (300, 96), dtype=jnp.float32)
    y2 = jax.random.normal(ky2, (300, 96), dtype=jnp.float32)
    loss2 = jax.block_until_ready(
        infonce_loss(x2, y2, log_temperature, block_size=128,
                     matmul_dtype=jnp.float32))
    ref2 = infonce_ref(x2, y2, log_temperature)
    assert jnp.isfinite(loss2), "loss2 is not finite"
    assert jnp.allclose(loss2, ref2, rtol=1e-4, atol=1e-4), (loss2, ref2)

    # Case 3: same data, exact two-exp fallback path (robust for unbounded scale).
    loss3 = jax.block_until_ready(
        infonce_loss(x2, y2, log_temperature, block_size=128,
                     matmul_dtype=jnp.float32, single_exp=False))
    assert jnp.isfinite(loss3), "loss3 is not finite"
    assert jnp.allclose(loss3, ref2, rtol=1e-4, atol=1e-4), (loss3, ref2)

    # Case 4: default config (bf16 MXU operands, block_size=512) -> looser tol.
    loss4 = jax.block_until_ready(infonce_loss(x2, y2, log_temperature))
    assert jnp.isfinite(loss4), "loss4 is not finite"
    assert jnp.allclose(loss4, ref2, rtol=3e-2, atol=3e-2), (loss4, ref2)

    print("KERNEL_OK")
</pallas_src>

<mosaic_0001>
module attributes {stable_mosaic.version = 11 : i64} {
  func.func @_infonce_kernel(%arg0: i32, %arg1: i32, %arg2: memref<8x128xf32, #tpu.memory_space<vmem>>, %arg3: memref<8x128xf32, #tpu.memory_space<vmem>>, %arg4: memref<1x1xf32, #tpu.memory_space<vmem>>, %arg5: memref<8x1xf32, #tpu.memory_space<vmem>>, %arg6: memref<8x1xf32, #tpu.memory_space<vmem>>, %arg7: memref<1x1x8xf32, #tpu.memory_space<vmem>>, %arg8: memref<1x1x8xf32, #tpu.memory_space<vmem>>, %arg9: memref<1x1xf32, #tpu.memory_space<vmem>>) attributes {dimension_semantics = [#tpu.dimension_semantics<arbitrary>, #tpu.dimension_semantics<arbitrary>], iteration_bounds = array<i64: 1, 1>, scalar_prefetch = 0 : i64, scratch_operands = 5 : i64, tpu.core_type = #tpu.core_type<tc>, window_params = [{transform_indices = @transform_0, window_bounds = array<i64: 8, 128>}, {transform_indices = @transform_1, window_bounds = array<i64: 8, 128>}, {pipeline_mode = #tpu.pipeline_mode<synchronous>, transform_indices = @transform_2, window_bounds = array<i64: 1, 1>}]} {
    %c0_i32 = arith.constant 0 : i32
    %0 = arith.cmpi eq, %arg0, %c0_i32 : i32
    %c0_i32_0 = arith.constant 0 : i32
    %1 = arith.cmpi eq, %arg1, %c0_i32_0 : i32
    %2 = arith.andi %0, %1 : i1
    %3 = arith.extui %2 : i1 to i32
    %c0_i32_1 = arith.constant 0 : i32
    %4 = arith.cmpi ne, %3, %c0_i32_1 : i32
    scf.if %4 {
      %cst_39 = arith.constant 0.000000e+00 : f32
      %83 = vector.broadcast %cst_39 : f32 to vector<1x1xf32>
      %c0_40 = arith.constant 0 : index
      %c0_41 = arith.constant 0 : index
      %84 = vector.load %arg9[%c0_40, %c0_41] : memref<1x1xf32, #tpu.memory_space<vmem>>, vector<1x1xf32>
      tpu.vector_store %arg9[%c0_40, %c0_41], %83 {strides = array<i32>} : memref<1x1xf32, #tpu.memory_space<vmem>>, vector<1x1xf32>,
    } else {
    }
    %c0 = arith.constant 0 : index
    %c0_2 = arith.constant 0 : index
    %5 = vector.load %arg3[%c0, %c0_2] : memref<8x128xf32, #tpu.memory_space<vmem>>, vector<8x128xf32>
    %c0_3 = arith.constant 0 : index
    %c0_4 = arith.constant 0 : index
    %6 = vector.load %arg2[%c0_3, %c0_4] : memref<8x128xf32, #tpu.memory_space<vmem>>, vector<8x128xf32>
    %cst = arith.constant dense<0.000000e+00> : vector<8x8xf32>
    %7 = tpu.matmul %5, %6, %cst {dimension_numbers = #tpu.dot_dimension_numbers<[1], [1], [0], [0], [0, 0, 1, 0], [], []>} : vector<8x128xf32>, vector<8x128xf32>, vector<8x8xf32> -> vector<8x8xf32>
    %c0_i32_5 = arith.constant 0 : i32
    %8 = arith.cmpi eq, %arg1, %c0_i32_5 : i32
    %9 = arith.extui %8 : i1 to i32
    %c0_i32_6 = arith.constant 0 : i32
    %10 = arith.cmpi ne, %9, %c0_i32_6 : i32
    scf.if %10 {
      %cst_39 = arith.constant -1.000000e+30 : f32
      %83 = vector.broadcast %cst_39 : f32 to vector<8x1xf32>
      %c0_40 = arith.constant 0 : index
      %c0_41 = arith.constant 0 : index
      %84 = vector.load %arg5[%c0_40, %c0_41] : memref<8x1xf32, #tpu.memory_space<vmem>>, vector<8x1xf32>
      tpu.vector_store %arg5[%c0_40, %c0_41], %83 {strides = array<i32>} : memref<8x1xf32, #tpu.memory_space<vmem>>, vector<8x1xf32>,
      %cst_42 = arith.constant 0.000000e+00 : f32
      %85 = vector.broadcast %cst_42 : f32 to vector<8x1xf32>
      %c0_43 = arith.constant 0 : index
      %c0_44 = arith.constant 0 : index
      %86 = vector.load %arg6[%c0_43, %c0_44] : memref<8x1xf32, #tpu.memory_space<vmem>>, vector<8x1xf32>
      tpu.vector_store %arg6[%c0_43, %c0_44], %85 {strides = array<i32>} : memref<8x1xf32, #tpu.memory_space<vmem>>, vector<8x1xf32>,
    } else {
    }
    %c0_7 = arith.constant 0 : index
    %c0_8 = arith.constant 0 : index
    %11 = vector.load %arg5[%c0_7, %c0_8] : memref<8x1xf32, #tpu.memory_space<vmem>>, vector<8x1xf32>
    %cst_9 = arith.constant dense<0xFF800000> : vector<8xf32>
    %12 = vector.multi_reduction <maximumf>, %7, %cst_9 [1] : vector<8x8xf32> to vector<8xf32>
    %13 = vector.shape_cast %12 : vector<8xf32> to vector<8x1xf32>
    %14 = arith.maximumf %11, %13 : vector<8x1xf32>
    %15 = vector.broadcast %14 : vector<8x1xf32> to vector<8x8xf32>
    %16 = arith.subf %7, %15 : vector<8x8xf32>
    %17 = math.exp %16 : vector<8x8xf32>
    %18 = arith.subf %11, %14 : vector<8x1xf32>
    %19 = math.exp %18 : vector<8x1xf32>
    %c0_10 = arith.constant 0 : index
    %c0_11 = arith.constant 0 : index
    %20 = vector.load %arg6[%c0_10, %c0_11] : memref<8x1xf32, #tpu.memory_space<vmem>>, vector<8x1xf32>
    %21 = arith.mulf %19, %20 : vector<8x1xf32>
    %cst_12 = arith.constant dense<0.000000e+00> : vector<8xf32>
    %22 = vector.multi_reduction <add>, %17, %cst_12 [1] : vector<8x8xf32> to vector<8xf32>
    %23 = vector.shape_cast %22 : vector<8xf32> to vector<8x1xf32>
    %24 = arith.addf %21, %23 : vector<8x1xf32>
    %c0_13 = arith.constant 0 : index
    %c0_14 = arith.constant 0 : index
    %25 = vector.load %arg6[%c0_13, %c0_14] : memref<8x1xf32, #tpu.memory_space<vmem>>, vector<8x1xf32>
    tpu.vector_store %arg6[%c0_13, %c0_14], %24 {strides = array<i32>} : memref<8x1xf32, #tpu.memory_space<vmem>>, vector<8x1xf32>,
    %c0_15 = arith.constant 0 : index
    %c0_16 = arith.constant 0 : index
    %26 = vector.load %arg5[%c0_15, %c0_16] : memref<8x1xf32, #tpu.memory_space<vmem>>, vector<8x1xf32>
    tpu.vector_store %arg5[%c0_15, %c0_16], %14 {strides = array<i32>} : memref<8x1xf32, #tpu.memory_space<vmem>>, vector<8x1xf32>,
    %c0_i32_17 = arith.constant 0 : i32
    %27 = arith.cmpi eq, %arg1, %c0_i32_17 : i32
    %28 = arith.extui %27 : i1 to i32
    %c0_i32_18 = arith.constant 0 : i32
    %29 = arith.cmpi ne, %28, %c0_i32_18 : i32
    scf.if %29 {
      %c0_39 = arith.constant 0 : index
      %c0_40 = arith.constant 0 : index
      %83 = vector.load %arg5[%c0_39, %c0_40] : memref<8x1xf32, #tpu.memory_space<vmem>>, vector<8x1xf32>
      %c0_41 = arith.constant 0 : index
      %c0_42 = arith.constant 0 : index
      %84 = vector.load %arg6[%c0_41, %c0_42] : memref<8x1xf32, #tpu.memory_space<vmem>>, vector<8x1xf32>
      %85 = math.log %84 : vector<8x1xf32>
      %86 = arith.addf %83, %85 : vector<8x1xf32>
      %c0_43 = arith.constant 0 : index
      %c0_44 = arith.constant 0 : index
      %87 = vector.load %arg9[%c0_43, %c0_44] : memref<1x1xf32, #tpu.memory_space<vmem>>, vector<1x1xf32>
      %88 = vector.shape_cast %86 : vector<8x1xf32> to vector<1x8x1xf32>
      %cst_45 = arith.constant dense<0.000000e+00> : vector<1xf32>
      %89 = vector.multi_reduction <add>, %88, %cst_45 [1, 2] : vector<1x8x1xf32> to vector<1xf32>
      %90 = vector.shape_cast %89 : vector<1xf32> to vector<1x1x1xf32>
      %91 = vector.extract %90[0, 0, 0] : f32 from vector<1x1x1xf32>
      %92 = vector.broadcast %91 : f32 to vector<1x1xf32>
      %93 = arith.addf %87, %92 : vector<1x1xf32>
      %c0_46 = arith.constant 0 : index
      %c0_47 = arith.constant 0 : index
      %94 = vector.load %arg9[%c0_46, %c0_47] : memref<1x1xf32, #tpu.memory_space<vmem>>, vector<1x1xf32>
      tpu.vector_store %arg9[%c0_46, %c0_47], %93 {strides = array<i32>} : memref<1x1xf32, #tpu.memory_space<vmem>>, vector<1x1xf32>,
    } else {
    }
    %c0_i32_19 = arith.constant 0 : i32
    %30 = arith.cmpi eq, %arg0, %c0_i32_19 : i32
    %31 = arith.extui %30 : i1 to i32
    %c0_i32_20 = arith.constant 0 : i32
    %32 = arith.cmpi ne, %31, %c0_i32_20 : i32
    scf.if %32 {
      %cst_39 = arith.constant -1.000000e+30 : f32
      %83 = vector.broadcast %cst_39 : f32 to vector<1x8xf32>
      %84 = arith.index_cast %arg1 : i32 to index
      %c0_40 = arith.constant 0 : index
      %c0_41 = arith.constant 0 : index
      %85 = vector.load %arg7[%84, %c0_40, %c0_41] : memref<1x1x8xf32, #tpu.memory_space<vmem>>, vector<1x1x8xf32>
      %86 = vector.shape_cast %85 : vector<1x1x8xf32> to vector<1x8xf32>
      %87 = vector.shape_cast %83 : vector<1x8xf32> to vector<1x1x8xf32>
      tpu.vector_store %arg7[%84, %c0_40, %c0_41], %87 {strides = array<i32>} : memref<1x1x8xf32, #tpu.memory_space<vmem>>, vector<1x1x8xf32>,
      %cst_42 = arith.constant 0.000000e+00 : f32
      %88 = vector.broadcast %cst_42 : f32 to vector<1x8xf32>
      %89 = arith.index_cast %arg1 : i32 to index
      %c0_43 = arith.constant 0 : index
      %c0_44 = arith.constant 0 : index
      %90 = vector.load %arg8[%89, %c0_43, %c0_44] : memref<1x1x8xf32, #tpu.memory_space<vmem>>, vector<1x1x8xf32>
      %91 = vector.shape_cast %90 : vector<1x1x8xf32> to vector<1x8xf32>
      %92 = vector.shape_cast %88 : vector<1x8xf32> to vector<1x1x8xf32>
      tpu.vector_store %arg8[%89, %c0_43, %c0_44], %92 {strides = array<i32>} : memref<1x1x8xf32, #tpu.memory_space<vmem>>, vector<1x1x8xf32>,
    } else {
    }
    %33 = arith.index_cast %arg1 : i32 to index
    %c0_21 = arith.constant 0 : index
    %c0_22 = arith.constant 0 : index
    %34 = vector.load %arg7[%33, %c0_21, %c0_22] : memref<1x1x8xf32, #tpu.memory_space<vmem>>, vector<1x1x8xf32>
    %35 = vector.shape_cast %34 : vector<1x1x8xf32> to vector<1x8xf32>
    %cst_23 = arith.constant dense<0xFF800000> : vector<8xf32>
    %36 = vector.multi_reduction <maximumf>, %7, %cst_23 [0] : vector<8x8xf32> to vector<8xf32>
    %37 = vector.shape_cast %36 : vector<8xf32> to vector<1x8xf32>
    %38 = arith.maximumf %35, %37 : vector<1x8xf32>
    %39 = vector.shape_cast %14 : vector<8x1xf32> to vector<1x8x1xf32>
    %cst_24 = arith.constant dense<0xFF800000> : vector<1xf32>
    %40 = vector.multi_reduction <maximumf>, %39, %cst_24 [1, 2] : vector<1x8x1xf32> to vector<1xf32>
    %41 = vector.shape_cast %40 : vector<1xf32> to vector<1x1x1xf32>
    %42 = vector.extract %41[0, 0, 0] : f32 from vector<1x1x1xf32>
    %43 = vector.broadcast %42 : f32 to vector<1x1xf32>
    %44 = vector.broadcast %43 : vector<1x1xf32> to vector<8x1xf32>
    %45 = arith.subf %14, %44 : vector<8x1xf32>
    %46 = math.exp %45 : vector<8x1xf32>
    %47 = vector.broadcast %46 : vector<8x1xf32> to vector<8x8xf32>
    %48 = arith.mulf %17, %47 : vector<8x8xf32>
    %cst_25 = arith.constant dense<0.000000e+00> : vector<8xf32>
    %49 = vector.multi_reduction <add>, %48, %cst_25 [0] : vector<8x8xf32> to vector<8xf32>
    %50 = vector.shape_cast %49 : vector<8xf32> to vector<1x8xf32>
    %51 = vector.broadcast %43 : vector<1x1xf32> to vector<1x8xf32>
    %52 = arith.subf %51, %38 : vector<1x8xf32>
    %cst_26 = arith.constant 8.500000e+01 : f32
    %53 = vector.broadcast %cst_26 : f32 to vector<1x8xf32>
    %54 = arith.minimumf %52, %53 : vector<1x8xf32>
    %55 = math.exp %54 : vector<1x8xf32>
    %56 = arith.mulf %55, %50 : vector<1x8xf32>
    %57 = arith.subf %35, %38 : vector<1x8xf32>
    %58 = math.exp %57 : vector<1x8xf32>
    %59 = arith.index_cast %arg1 : i32 to index
    %c0_27 = arith.constant 0 : index
    %c0_28 = arith.constant 0 : index
    %60 = vector.load %arg8[%59, %c0_27, %c0_28] : memref<1x1x8xf32, #tpu.memory_space<vmem>>, vector<1x1x8xf32>
    %61 = vector.shape_cast %60 : vector<1x1x8xf32> to vector<1x8xf32>
    %62 = arith.mulf %58, %61 : vector<1x8xf32>
    %63 = arith.addf %62, %56 : vector<1x8xf32>
    %64 = arith.index_cast %arg1 : i32 to index
    %c0_29 = arith.constant 0 : index
    %c0_30 = arith.constant 0 : index
    %65 = vector.load %arg8[%64, %c0_29, %c0_30] : memref<1x1x8xf32, #tpu.memory_space<vmem>>, vector<1x1x8xf32>
    %66 = vector.shape_cast %65 : vector<1x1x8xf32> to vector<1x8xf32>
    %67 = vector.shape_cast %63 : vector<1x8xf32> to vector<1x1x8xf32>
    tpu.vector_store %arg8[%64, %c0_29, %c0_30], %67 {strides = array<i32>} : memref<1x1x8xf32, #tpu.memory_space<vmem>>, vector<1x1x8xf32>,
    %68 = arith.index_cast %arg1 : i32 to index
    %c0_31 = arith.constant 0 : index
    %c0_32 = arith.constant 0 : index
    %69 = vector.load %arg7[%68, %c0_31, %c0_32] : memref<1x1x8xf32, #tpu.memory_space<vmem>>, vector<1x1x8xf32>
    %70 = vector.shape_cast %69 : vector<1x1x8xf32> to vector<1x8xf32>
    %71 = vector.shape_cast %38 : vector<1x8xf32> to vector<1x1x8xf32>
    tpu.vector_store %arg7[%68, %c0_31, %c0_32], %71 {strides = array<i32>} : memref<1x1x8xf32, #tpu.memory_space<vmem>>, vector<1x1x8xf32>,
    %c0_i32_33 = arith.constant 0 : i32
    %72 = arith.cmpi eq, %arg0, %c0_i32_33 : i32
    %73 = arith.extui %72 : i1 to i32
    %c0_i32_34 = arith.constant 0 : i32
    %74 = arith.cmpi ne, %73, %c0_i32_34 : i32
    scf.if %74 {
      %83 = arith.index_cast %arg1 : i32 to index
      %c0_39 = arith.constant 0 : index
      %c0_40 = arith.constant 0 : index
      %84 = vector.load %arg7[%83, %c0_39, %c0_40] : memref<1x1x8xf32, #tpu.memory_space<vmem>>, vector<1x1x8xf32>
      %85 = vector.shape_cast %84 : vector<1x1x8xf32> to vector<1x8xf32>
      %86 = arith.index_cast %arg1 : i32 to index
      %c0_41 = arith.constant 0 : index
      %c0_42 = arith.constant 0 : index
      %87 = vector.load %arg8[%86, %c0_41, %c0_42] : memref<1x1x8xf32, #tpu.memory_space<vmem>>, vector<1x1x8xf32>
      %88 = vector.shape_cast %87 : vector<1x1x8xf32> to vector<1x8xf32>
      %89 = math.log %88 : vector<1x8xf32>
      %90 = arith.addf %85, %89 : vector<1x8xf32>
      %c0_43 = arith.constant 0 : index
      %c0_44 = arith.constant 0 : index
      %91 = vector.load %arg9[%c0_43, %c0_44] : memref<1x1xf32, #tpu.memory_space<vmem>>, vector<1x1xf32>
      %92 = vector.shape_cast %90 : vector<1x8xf32> to vector<1x1x8xf32>
      %cst_45 = arith.constant dense<0.000000e+00> : vector<1xf32>
      %93 = vector.multi_reduction <add>, %92, %cst_45 [1, 2] : vector<1x1x8xf32> to vector<1xf32>
      %94 = vector.shape_cast %93 : vector<1xf32> to vector<1x1x1xf32>
      %95 = vector.extract %94[0, 0, 0] : f32 from vector<1x1x1xf32>
      %96 = vector.broadcast %95 : f32 to vector<1x1xf32>
      %97 = arith.addf %91, %96 : vector<1x1xf32>
      %c0_46 = arith.constant 0 : index
      %c0_47 = arith.constant 0 : index
      %98 = vector.load %arg9[%c0_46, %c0_47] : memref<1x1xf32, #tpu.memory_space<vmem>>, vector<1x1xf32>
      tpu.vector_store %arg9[%c0_46, %c0_47], %97 {strides = array<i32>} : memref<1x1xf32, #tpu.memory_space<vmem>>, vector<1x1xf32>,
    } else {
    }
    %75 = arith.cmpi eq, %arg0, %arg1 : i32
    %76 = arith.extui %75 : i1 to i32
    %c0_i32_35 = arith.constant 0 : i32
    %77 = arith.cmpi ne, %76, %c0_i32_35 : i32
    scf.if %77 {
      %c0_39 = arith.constant 0 : index
      %c0_40 = arith.constant 0 : index
      %83 = vector.load %arg9[%c0_39, %c0_40] : memref<1x1xf32, #tpu.memory_space<vmem>>, vector<1x1xf32>
      %c0_41 = arith.constant 0 : index
      %c0_42 = arith.constant 0 : index
      %84 = vector.load %arg3[%c0_41, %c0_42] : memref<8x128xf32, #tpu.memory_space<vmem>>, vector<8x128xf32>
      %c0_43 = arith.constant 0 : index
      %c0_44 = arith.constant 0 : index
      %85 = vector.load %arg2[%c0_43, %c0_44] : memref<8x128xf32, #tpu.memory_space<vmem>>, vector<8x128xf32>
      %86 = arith.mulf %84, %85 : vector<8x128xf32>
      %87 = vector.shape_cast %86 : vector<8x128xf32> to vector<1x8x128xf32>
      %cst_45 = arith.constant dense<0.000000e+00> : vector<1xf32>
      %88 = vector.multi_reduction <add>, %87, %cst_45 [1, 2] : vector<1x8x128xf32> to vector<1xf32>
      %89 = vector.shape_cast %88 : vector<1xf32> to vector<1x1x1xf32>
      %90 = vector.extract %89[0, 0, 0] : f32 from vector<1x1x1xf32>
      %91 = vector.broadcast %90 : f32 to vector<1x1xf32>
      %cst_46 = arith.constant -2.000000e+00 : f32
      %92 = vector.broadcast %cst_46 : f32 to vector<1x1xf32>
      %93 = arith.mulf %92, %91 : vector<1x1xf32>
      %94 = arith.addf %83, %93 : vector<1x1xf32>
      %c0_47 = arith.constant 0 : index
      %c0_48 = arith.constant 0 : index
      %95 = vector.load %arg9[%c0_47, %c0_48] : memref<1x1xf32, #tpu.memory_space<vmem>>, vector<1x1xf32>
      tpu.vector_store %arg9[%c0_47, %c0_48], %94 {strides = array<i32>} : memref<1x1xf32, #tpu.memory_space<vmem>>, vector<1x1xf32>,
    } else {
    }
    %c0_i32_36 = arith.constant 0 : i32
    %78 = arith.cmpi eq, %arg0, %c0_i32_36 : i32
    %c0_i32_37 = arith.constant 0 : i32
    %79 = arith.cmpi eq, %arg1, %c0_i32_37 : i32
    %80 = arith.andi %78, %79 : i1
    %81 = arith.extui %80 : i1 to i32
    %c0_i32_38 = arith.constant 0 : i32
    %82 = arith.cmpi ne, %81, %c0_i32_38 : i32
    scf.if %82 {
      %c0_39 = arith.constant 0 : index
      %c0_40 = arith.constant 0 : index
      %83 = vector.load %arg9[%c0_39, %c0_40] : memref<1x1xf32, #tpu.memory_space<vmem>>, vector<1x1xf32>
      %cst_41 = arith.constant 6.250000e-02 : f32
      %84 = vector.broadcast %cst_41 : f32 to vector<1x1xf32>
      %85 = arith.mulf %83, %84 : vector<1x1xf32>
      %c0_42 = arith.constant 0 : index
      %c0_43 = arith.constant 0 : index
      %86 = vector.load %arg4[%c0_42, %c0_43] : memref<1x1xf32, #tpu.memory_space<vmem>>, vector<1x1xf32>
      tpu.vector_store %arg4[%c0_42, %c0_43], %85 {strides = array<i32>} : memref<1x1xf32, #tpu.memory_space<vmem>>, vector<1x1xf32>,
    } else {
    }
    return
  }
  func.func @transform_0(%arg0: i32, %arg1: i32) -> (i32, i32) {
    %c0_i32 = arith.constant 0 : i32
    %c0_i32_0 = arith.constant 0 : i32
    return %arg1, %c0_i32 : i32, i32
  }
  func.func @transform_1(%arg0: i32, %arg1: i32) -> (i32, i32) {
    %c0_i32 = arith.constant 0 : i32
    %c0_i32_0 = arith.constant 0 : i32
    return %arg0, %c0_i32 : i32, i32
  }
  func.func @transform_2(%arg0: i32, %arg1: i32) -> (i32, i32) {
    %c0_i32 = arith.constant 0 : i32
    %c0_i32_0 = arith.constant 0 : i32
    %c0_i32_1 = arith.constant 0 : i32
    return %c0_i32, %c0_i32_0 : i32, i32
  }
}

</mosaic_0001>

<bundles_post_ra>
// kernel: tpu_custom_call.1
= control target key start
LH: loop header
LB: loop body
LE: loop exit
PB: predicated region body
PF: predicated region fallthrough
CT: control target
= control target key end

     0   :  { %7 = vsyncpa [#allocation8], 0  ;;  %s469_s0 = inlined_call_operand.hbm [shape: f32[8,128], index: 0, kind: input, shape index: {}]   ;;  %s470_s1 = inlined_call_operand.hbm [shape: f32[8,128], index: 1, kind: input, shape index: {}]   ;;  %s471_s2 = inlined_call_operand.hbm [shape: f32[1,1], index: 2, kind: output, shape index: {}]  }
   0x1   :  { %8 = vsyncpa [#allocation11], 0 }
   0x2   :  { %9 = vsyncpa [#allocation9], 0  ;;  %s397_s9 = smov [#allocation7]   ;;  %s398_s11 = smov [#allocation10]  }
   0x3   :  { %s16_s10 = sshll.u32 %s397_s9, 4  ;;  %s26_s12 = sshll.u32 %s398_s11, 4  ;;  %s17_s10 = int_to_ptr.vmem [resolvable:$true] %s16_s10  ;;  %s27_s12 = int_to_ptr.vmem [resolvable:$true] %s26_s12 }
   0x4   :  { %s339_s13 = scalar_lea.vmem %s17_s10, 128  ;;  %p344_p1 = scmp.lt.s32.totalorder %s17_s10, %s17_s10 }
   0x5   :  { %p340_p0 = scmp.ne.s32.totalorder %s17_s10, %s339_s13  ;;  %p345_p2 = scmp.lt.s32.totalorder %s339_s13, %s339_s13 }
   0x7   :  { %p346_p3 = por %p345_p2, %p344_p1 }
   0x9   :  { %p347_p4 = pnand %p346_p3, %p340_p0 }
   0xb   :  { %350 = shalt.err (!%p347_p4)
}
   0xc   :  { %19 = dma.hbm_to_vmem [thread:$0]  %s469_s0, 128, %s17_s10, [#allocation8]  }
   0xd   :  { %s359_s16 = scalar_lea.vmem %s27_s12, 128  ;;  %p364_p6 = scmp.lt.s32.totalorder %s27_s12, %s27_s12 }
   0xe   :  { %p360_p5 = scmp.ne.s32.totalorder %s27_s12, %s359_s16  ;;  %p365_p7 = scmp.lt.s32.totalorder %s359_s16, %s359_s16 }
  0x10   :  { %p366_p8 = por %p365_p7, %p364_p6 }
  0x12   :  { %p367_p9 = pnand %p366_p8, %p360_p5 }
  0x14   :  { %370 = shalt.err (!%p367_p9)
}
  0x15   :  { %29 = dma.hbm_to_vmem [thread:$0]  %s470_s1, 128, %s27_s12, [#allocation11]  }
  0x16   :  { %391 = dma.done.wait [#allocation8], 128  }
  0x17   :  { %392 = vsyncadd [#allocation8], 4294967168 }
  0x18   :  { %393 = dma.done.wait [#allocation11], 128  }
  0x19   :  { %394 = vsyncadd [#allocation11], 4294967168  ;;  %vm119_vm0 = vcmask 7168   ;;  %v399_v0 = vmov 0.0   ;;  %vm400_vm1 = vmmov 0   ;;  %v429_v1 = vld [vmem:[#allocation7] sm:$0xff] }
  0x1a   :  { %295 = vmatprep.subr.mxu0 %v399_v0  ;;  %121 = vst.msk [vmem:[#allocation3] sm:$0xff] %vm119_vm0, %v399_v0  ;;  %297 = vmatprep.mubr.msk.f32.mxu0 %vm400_vm1, %v399_v0  ;;  %v432_v2 = vld [vmem:[#allocation10] sm:$0xff]  ;;  %vm174_vm2 = vcmask 57344   ;;  %v401_v3 = vmov -1e+30   ;;  %vm123_vm3 = vcmask 64512  }
  0x1b   :  { %296 = vmatpush3.xpose.msra.mxu0 %v429_v1  ;;  %120 = vst.msk [vmem:[#allocation2] sm:$0xff] %vm119_vm0, %v401_v3  ;;  %v402_v14 = vmov 0   ;;  %vm42_vm4 = vcmask 0   ;;  %v256_v59 = vmul.f32 %v429_v1, %v432_v2  ;;  %s403_s21 = smov [#allocation12]  }
  0x1c   :  { %175 = vst.msk [vmem:[#allocation4] sm:$0x1] %vm174_vm2, %v401_v3  ;;  %176 = vst.msk [vmem:[#allocation5] sm:$0x1] %vm174_vm2, %v399_v0  ;;  %315 = vset.pattern.permute.xlu0 %v402_v14  ;;  %316 = vset.pattern.permute.xlu1 %v402_v14  ;;  %s283_s22 = sshll.u32 %s403_s21, 4  ;;  %s284_s22 = int_to_ptr.vmem [resolvable:$true] %s283_s22 }
  0x1d   :  { %43 = vst.msk [vmem:[#allocation6] sm:$0x1] %vm42_vm4, %v399_v0  ;;  %s371_s23 = scalar_lea.vmem %s284_s22, 16  ;;  %s375_s24 = scalar_lea.vmem %s284_s22, 32 }
  0x1e   :  { %298 = vmatmul.mubr.f32.vlgmr.msra.gmra.mxu0 %v432_v2  ;;  %p372_p10 = scmp.ne.s32.totalorder %s284_s22, %s371_s23  ;;  %p376_p11 = scmp.lt.s32.totalorder %s284_s22, %s284_s22 }
  0x1f   :  { %p377_p12 = scmp.lt.s32.totalorder %s375_s24, %s371_s23 }
  0x21   :  { %v139_v27 = vld [vmem:[#allocation3] sm:$0xff]  ;;  %p378_p13 = por %p377_p12, %p376_p11 }
  0x22   :  { %v122_v16 = vld [vmem:[#allocation2] sm:$0xff] }
  0x23   :  { %v440_v12 = vld [vmem:[#allocation4] sm:$0x1]  ;;  %p379_p0 = pnand %p378_p13, %p372_p10 }
  0x24   :  { %v156_v52 = vld [vmem:[#allocation6] sm:$0x1] }
  0xde   :  { %v112_v4 = vpop.f32.mrf.mxu0 }
  0xdf   :  { %v124_v5 = vsel %vm123_vm3, %v112_v4, -inf }
  0xe0   :  { %125 = vmax.xlane.f32.xlu0 %v124_v5  ;;  %v178_v6 = vrot.slane %v124_v5, 4  ;;  %v299_v7 = vpop.f32.mrf.mxu0 }
  0xe2   :  { %v179_v8 = vmax.f32 %v124_v5, %v178_v6 }
  0xe4   :  { %v180_v9 = vrot.slane %v179_v8, 2 }
  0xe6   :  { %v181_v10 = vmax.f32 %v179_v8, %v180_v9 }
  0xe8   :  { %v182_v11 = vrot.slane %v181_v10, 1 }
  0xea   :  { %v183_v13 = vmax.f32 %v181_v10, %v182_v11  ;;  %v220_v10 = vld [vmem:[#allocation5] sm:$0x1] }
  0xec   :  { %v443_v15 = vmax.f32 %v440_v12, %v183_v13 }
  0xee   :  { %225 = vst.msk [vmem:[#allocation4] sm:$0x1] %vm174_vm2, %v443_v15  ;;  %v217_v61 = vsub.f32 %v440_v12, %v443_v15 }
  0xf0   :  { %v218_v63 = vmul.f32 1.442695, %v217_v61 }
 0x169   :  { %v126_v17 = vpop.xlane.xlu0 %125 }
 0x16a   :  { %v127_v18 = vmax.f32 %v122_v16, %v126_v17 }
 0x16c   :  { %147 = vst.msk [vmem:[#allocation2] sm:$0xff] %vm119_vm0, %v127_v18  ;;  %130 = vperm.xlu0 %315, %v127_v18   ;;  %v136_v24 = vsub.f32 %v122_v16, %v127_v18  ;;  %v185_v37 = vsel %vm119_vm0, %v127_v18, -inf }
 0x16e   :  { %v137_v25 = vmul.f32 1.442695, %v136_v24 }
 0x173   :  { %v151_v34 = vld [vmem:[#allocation2] sm:$0xff] }
 0x18b   :  { %257 = vadd.xlane.f32.xlu0 %v256_v59 }
 0x1e7   :  { %v131_v19 = vpop.permute.xlu0 %130 }
 0x1e8   :  { %v133_v20 = vsub.f32 %v112_v4, %v131_v19  ;;  %v229_v19 = vld [vmem:[#allocation4] sm:$0x1] }
 0x1ea   :  { %v134_v21 = vmul.f32 1.442695, %v133_v20 }
 0x1ec   :  { %317 = vpow2.f32 %v134_v21 }
 0x1ed   :  { %319 = vpow2.f32 %v137_v25 }
 0x1f9   :  { %v318_v22 = vpop.eup %317 }
 0x1fa   :  { %v141_v23 = vsel %vm123_vm3, %v318_v22, 0.0  ;;  %v320_v26 = vpop.eup %319 }
 0x1fb   :  { %142 = vadd.xlane.f32.xlu1 %v141_v23  ;;  %v140_v28 = vmul.f32 %v320_v26, %v139_v27 }
 0x284   :  { %v143_v29 = vpop.xlane.xlu1 %142 }
 0x285   :  { %v144_v30 = vadd.f32 %v143_v29, %v140_v28 }
 0x287   :  { %146 = vst.msk [vmem:[#allocation3] sm:$0xff] %vm119_vm0, %v144_v30 }
 0x28e   :  { %v152_v31 = vld [vmem:[#allocation3] sm:$0xff] }
 0x28f   :  { %321 = vlog2.f32 %v152_v31 }
 0x29c   :  { %v322_v32 = vpop.eup %321 }
 0x29d   :  { %v154_v33 = vmul.f32 0.6931472, %v322_v32 }
 0x29f   :  { %v155_v35 = vadd.f32 %v154_v33, %v151_v34 }
 0x2a1   :  { %v157_v36 = vsel %vm119_vm0, %v155_v35, 0.0 }
 0x2a2   :  { %158 = vadd.xlane.f32.xlu1 %v157_v36 }
 0x2a6   :  { %186 = vmax.xlane.f32.xlu1 %v185_v37 }
 0x32b   :  { %v159_v38 = vpop.xlane.xlu1 %158 }
 0x32c   :  { %v160_v39 = vrot.slane %v159_v38, 4 }
 0x32e   :  { %v161_v40 = vadd.f32 %v160_v39, %v159_v38 }
 0x32f   :  { %v187_v41 = vpop.xlane.xlu1 %186 }
 0x330   :  { %v162_v42 = vrot.slane %v161_v40, 2  ;;  %v188_v43 = vrot.slane %v187_v41, 4 }
 0x332   :  { %v189_v44 = vmax.f32 %v187_v41, %v188_v43  ;;  %v163_v45 = vadd.f32 %v162_v42, %v161_v40 }
 0x334   :  { %v190_v46 = vrot.slane %v189_v44, 2  ;;  %v164_v47 = vrot.slane %v163_v45, 1 }
 0x336   :  { %v165_v48 = vadd.f32 %v164_v47, %v163_v45  ;;  %v191_v49 = vmax.f32 %v189_v44, %v190_v46 }
 0x338   :  { %300 = vpush %v165_v48  ;;  %v192_v50 = vrot.slane %v191_v49, 1 }
 0x33a   :  { %v193_v51 = vmax.f32 %v191_v49, %v192_v50 }
 0x33c   :  { %302 = vpush %v193_v51 }
 0x369   :  { %s301_s0 = spop %300 }
 0x36a   :  { %v167_v53 = vstv %s301_s0 }
 0x36b   :  { %v168_v54 = vadd.f32 %v167_v53, %v156_v52 }
 0x36d   :  { %170 = vst.msk [vmem:[#allocation6] sm:$0x1] %vm42_vm4, %v168_v54  ;;  %s303_s1 = spop %302 }
 0x36e   :  { %v195_v55 = vstv %s303_s1 }
 0x36f   :  { %v196_v56 = vsub.f32 %v127_v18, %v195_v55  ;;  %v212_v60 = vsub.f32 %v195_v55, %v443_v15 }
 0x371   :  { %v197_v57 = vmul.f32 1.442695, %v196_v56  ;;  %v213_v62 = vmin.f32 %v212_v60, 85.0 }
 0x373   :  { %323 = vpow2.f32 %v197_v57  ;;  %v214_v0 = vmul.f32 1.442695, %v213_v62 }
 0x374   :  { %325 = vpow2.f32 %v218_v63  ;;  %v234_v36 = vld [vmem:[#allocation6] sm:$0x1] }
 0x375   :  { %327 = vpow2.f32 %v214_v0 }
 0x380   :  { %v324_v58 = vpop.eup %323 }
 0x381   :  { %201 = vperm.xlu1 %316, %v324_v58   ;;  %v326_v2 = vpop.eup %325 }
 0x382   :  { %v328_v13 = vpop.eup %327  ;;  %v221_v12 = vmul.f32 %v326_v2, %v220_v10 }
 0x3fc   :  { %v202_v3 = vpop.permute.xlu1 %201 }
 0x3fd   :  { %v204_v4 = vmul.f32 %v318_v22, %v202_v3  ;;  %v258_v22 = vpop.xlane.xlu0 %257 }
 0x3fe   :  { %v259_v23 = vrot.slane %v258_v22, 4 }
 0x3ff   :  { %v205_v5 = vsel %vm123_vm3, %v204_v4, 0.0 }
 0x400   :  { %v206_v6 = vrot.slane %v205_v5, 4  ;;  %v260_v24 = vadd.f32 %v259_v23, %v258_v22 }
 0x402   :  { %v207_v7 = vadd.f32 %v206_v6, %v205_v5  ;;  %v261_v25 = vrot.slane %v260_v24, 2 }
 0x404   :  { %v208_v8 = vrot.slane %v207_v7, 2  ;;  %v262_v28 = vadd.f32 %v261_v25, %v260_v24 }
 0x406   :  { %v209_v9 = vadd.f32 %v208_v8, %v207_v7  ;;  %v263_v31 = vrot.slane %v262_v28, 1 }
 0x408   :  { %v210_v1 = vrot.slane %v209_v9, 1  ;;  %v264_v34 = vadd.f32 %v263_v31, %v262_v28 }
 0x40a   :  { %v211_v11 = vadd.f32 %v210_v1, %v209_v9 }
 0x40c   :  { %v216_v14 = vmul.f32 %v328_v13, %v211_v11 }
 0x40e   :  { %v222_v15 = vadd.f32 %v221_v12, %v216_v14 }
 0x410   :  { %224 = vst.msk [vmem:[#allocation5] sm:$0x1] %vm174_vm2, %v222_v15 }
 0x417   :  { %v230_v16 = vld [vmem:[#allocation5] sm:$0x1] }
 0x418   :  { %329 = vlog2.f32 %v230_v16 }
 0x425   :  { %v330_v17 = vpop.eup %329 }
 0x426   :  { %v232_v18 = vmul.f32 0.6931472, %v330_v17 }
 0x428   :  { %v233_v20 = vadd.f32 %v232_v18, %v229_v19 }
 0x42a   :  { %v235_v21 = vsel %vm174_vm2, %v233_v20, 0.0 }
 0x42b   :  { %236 = vadd.xlane.f32.xlu1 %v235_v21 }
 0x4b4   :  { %v237_v26 = vpop.xlane.xlu1 %236 }
 0x4b5   :  { %v238_v27 = vrot.slane %v237_v26, 4 }
 0x4b7   :  { %v239_v29 = vadd.f32 %v238_v27, %v237_v26 }
 0x4b9   :  { %v240_v30 = vrot.slane %v239_v29, 2 }
 0x4bb   :  { %v241_v32 = vadd.f32 %v240_v30, %v239_v29 }
 0x4bd   :  { %v242_v33 = vrot.slane %v241_v32, 1 }
 0x4bf   :  { %v243_v35 = vadd.f32 %v242_v33, %v241_v32 }
 0x4c1   :  { %304 = vpush %v243_v35 }
 0x4c2   :  { %306 = vpush %v264_v34 }
 0x4f2   :  { %s305_s19 = spop %304 }
 0x4f3   :  { %v245_v37 = vstv %s305_s19  ;;  %s307_s20 = spop %306 }
 0x4f4   :  { %v246_v38 = vadd.f32 %v245_v37, %v234_v36  ;;  %v266_v39 = vstv %s307_s20 }
 0x4f5   :  { %v267_v40 = vmul.f32 -2.0, %v266_v39 }
 0x4f6   :  { %248 = vst.msk [vmem:[#allocation6] sm:$0x1] %vm42_vm4, %v246_v38 }
 0x4fd   :  { %v253_v41 = vld [vmem:[#allocation6] sm:$0x1] }
 0x4fe   :  { %v268_v42 = vadd.f32 %v267_v40, %v253_v41 }
 0x500   :  { %270 = vst.msk [vmem:[#allocation6] sm:$0x1] %vm42_vm4, %v268_v42 }
 0x507   :  { %v273_v43 = vld [vmem:[#allocation6] sm:$0x1] }
 0x508   :  { %v274_v44 = vmul.f32 0.0625, %v273_v43 }
 0x50a   :  { %276 = vst.msk [vmem:[#allocation12] sm:$0x1] %vm42_vm4, %v274_v44 }
 0x50b   :  { %382 = shalt.err (!%p379_p0)
}
 0x50c   :  { %286 = dma.vmem_to_hbm [thread:$0]  %s284_s22, 16, %s471_s2, [#allocation9]  }
 0x50d   :  { %395 = dma.done.wait [#allocation9], 16  }
 0x50e   :  { %396 = vsyncadd [#allocation9], 4294967280 }
 0x50f   :  { %290 = vsyncpa [#allocation8], 1 }
 0x510   :  { %291 = vsyncpa [#allocation11], 1 }
 0x511   :  { %292 = vsyncpa [#allocation9], 1 }

</bundles_post_ra>
